<compile_context>
chip_gen: v7x
topology: tpu7x:2x2x1
jax: 0.10.0
libtpu: 0.0.40
codegen_flags: <defaults>
</compile_context>

<pallas_src>
import functools

import jax
import jax.numpy as jnp
from jax.experimental import pallas as pl
from jax.experimental.pallas import tpu as pltpu


NEG_SLOPE = 0.2
LANE = 128


def _leaky_relu(y):
    return jnp.where(y > 0, y, NEG_SLOPE * y)


def _round_up(a, b):
    return (a + b - 1) // b * b


def block_kernel(x_ref, w1_ref, w2_ref, b1_ref, b2_ref, o_ref, *, k_taps):
    """One batch-group: y = lrelu(conv2(lrelu(conv1(x)))) as 2*K MXU matmuls.

    x_ref : (1, C_in, PW)      raw lane-dense input slab (BN batch slots, each
                               L lanes wide; tail padded to a multiple of 128)
    w1_ref: (K, C_out, C_in)   conv1 weights, tap-major (K never on lanes)
    w2_ref: (K, C_out, C_out)  conv2 weights, tap-major
    b1_ref: (C_out, 1) f32     conv1 bias
    b2_ref: (C_out, 1) f32     conv2 bias
    o_ref : (1, C_out, PW)     lane-dense output slab; per batch slot only the
                               first L2 lanes are valid (the wrapper discards
                               the rest), which makes the roll wrap-around and
                               cross-slot taps harmless.
    """
    x = x_ref[0]                        # (C_in, PW) in compute dtype
    pw = x.shape[-1]

    # ---- conv1: sum_k  W1[k] @ roll(x, -k)  (XLU rolls, MXU dots, f32 acc) ----
    y1 = jnp.dot(w1_ref[0], x, preferred_element_type=jnp.float32)
    for k in range(1, k_taps):
        xk = pltpu.roll(x, shift=pw - k, axis=1)      # xk[:, i] = x[:, (i+k)%pw]
        y1 = y1 + jnp.dot(w1_ref[k], xk, preferred_element_type=jnp.float32)
    y1 = _leaky_relu(y1 + b1_ref[...])                # (C_out, PW) f32

    # ---- conv2: same pattern on the activations (no (R2, PW) concat temp) ----
    y1c = y1.astype(w2_ref.dtype)
    y2 = jnp.dot(w2_ref[0], y1c, preferred_element_type=jnp.float32)
    for k in range(1, k_taps):
        yk = pltpu.roll(y1c, shift=pw - k, axis=1)
        y2 = y2 + jnp.dot(w2_ref[k], yk, preferred_element_type=jnp.float32)
    y2 = _leaky_relu(y2 + b2_ref[...])
    o_ref[0] = y2.astype(o_ref.dtype)


def block_forward(x, w1, b1, w2, b2, *, compute_dtype=jnp.bfloat16,
                  target_lanes=16384, vmem_target_bytes=8 << 20):
    """x: (N, C_in, L) -> (N, C_out, L - 2*(K-1)).  Matches PyTorch Block."""
    N, C_in, L = x.shape
    C_out, _, K = w1.shape
    L1 = L - (K - 1)
    L2 = L1 - (K - 1)
    if L2 < 1:
        raise ValueError("input length too small for two valid K-tap convs")
    out_dtype = x.dtype
    cb = jnp.dtype(compute_dtype).itemsize
    ob = jnp.dtype(out_dtype).itemsize

    # Per-lane VMEM footprint: double-buffered in/out DMA slabs + kernel temps.
    bytes_per_lane = (2 * C_in * cb              # input slab, 2-deep pipeline
                      + 2 * C_out * ob           # output slab, 2-deep pipeline
                      + (K + 1) * C_in * cb      # rolled-x temporaries
                      + (2 * K + 2) * C_out * 4)  # f32 y1/y2 + rolled y1 temps
    max_lanes = max(LANE, (vmem_target_bytes // bytes_per_lane) // LANE * LANE)

    # ---- batch blocking: BN batch elements folded into the lane axis ----
    if L1 >= LANE:
        # Already lane-dense per batch element; BN=1 keeps both input and
        # output layouts equal to (N, C, length) up to a cheap slice (no extra
        # HBM transpose pass).
        BN = 1
    else:
        g_min = 2 if N >= 2 else 1               # keep both v7x TCs fed
        BN = max(1, min(-(-N // g_min),
                        max(1, target_lanes // L),
                        max(1, max_lanes // L)))
    G = -(-N // BN)                               # grid steps (batch groups)
    Npad = G * BN
    W = BN * L                                    # valid lane width per group
    PW = _round_up(W, LANE)                       # padded lane-dense width
    # TODO(synk): for PW*bytes_per_lane beyond ~32 MiB (huge L with BN=1),
    # tile the length axis with a 2*(K-1)-lane halo per block instead.

    # ---- wrapper-side layout plumbing (no K-fold im2col inflation of x) ----
    xp = x if Npad == N else jnp.pad(x, ((0, Npad - N), (0, 0), (0, 0)))
    if BN == 1:
        xg = xp                                   # (G, C_in, L), G == Npad
    else:
        xg = (xp.reshape(G, BN, C_in, L)
                .transpose(0, 2, 1, 3)
                .reshape(G, C_in, W))
    xg = jnp.pad(xg, ((0, 0), (0, 0), (0, PW - W))).astype(compute_dtype)

    w1k = jnp.transpose(w1, (2, 0, 1)).astype(compute_dtype)   # (K, C_out, C_in)
    w2k = jnp.transpose(w2, (2, 0, 1)).astype(compute_dtype)   # (K, C_out, C_out)
    b1c = b1.astype(jnp.float32)[:, None]                      # (C_out, 1)
    b2c = b2.astype(jnp.float32)[:, None]                      # (C_out, 1)

    vmem_limit = int(min(32 << 20, max(8 << 20, 2 * PW * bytes_per_lane)))

    out_p = pl.pallas_call(
        functools.partial(block_kernel, k_taps=K),
        out_shape=jax.ShapeDtypeStruct((G, C_out, PW), out_dtype),
        grid_spec=pltpu.PrefetchScalarGridSpec(
            num_scalar_prefetch=0,
            grid=(G,),
            in_specs=[
                pl.BlockSpec((1, C_in, PW), lambda g: (g, 0, 0)),
                pl.BlockSpec((K, C_out, C_in), lambda g: (0, 0, 0)),
                pl.BlockSpec((K, C_out, C_out), lambda g: (0, 0, 0)),
                pl.BlockSpec((C_out, 1), lambda g: (0, 0)),
                pl.BlockSpec((C_out, 1), lambda g: (0, 0)),
            ],
            out_specs=pl.BlockSpec((1, C_out, PW), lambda g: (g, 0, 0)),
        ),
        compiler_params=pltpu.CompilerParams(
            dimension_semantics=("parallel",),     # shards groups on v7x's 2 TCs
            vmem_limit_bytes=vmem_limit),
    )(xg, w1k, w2k, b1c, b2c)

    # ---- unpack: per batch slot only the first L2 lanes are valid ----
    if BN == 1:
        return out_p[:N, :, :L2]                   # cheap slice, no transpose
    out = out_p[:, :, :W].reshape(G, C_out, BN, L)[..., :L2]
    return out.transpose(0, 2, 1, 3).reshape(Npad, C_out, L2)[:N]


# ---------------- reference (plain JAX) for correctness check ----------------
def _conv1d_ref(x, w, b):
    y = jax.lax.conv_general_dilated(
        x, w, window_strides=(1,), padding="VALID",
        dimension_numbers=("NCH", "OIH", "NCH"))
    return y + b[None, :, None]


def _block_ref(x, w1, b1, w2, b2):
    y = jax.nn.leaky_relu(_conv1d_ref(x, w1, b1), NEG_SLOPE)
    y = jax.nn.leaky_relu(_conv1d_ref(y, w2, b2), NEG_SLOPE)
    return y


if __name__ == "__main__":
    # Small shapes consistent with the module's forward (Conv1d => (N, C, L)).
    N, C_in, C_out, L, K = 2, 4, 8, 16, 3

    key = jax.random.PRNGKey(0)
    kx, k1, k2, k3, k4 = jax.random.split(key, 5)
    x = jax.random.normal(kx, (N, C_in, L), dtype=jnp.float32)
    w1 = jax.random.normal(k1, (C_out, C_in, K), dtype=jnp.float32) * 0.1
    b1 = jax.random.normal(k2, (C_out,), dtype=jnp.float32) * 0.1
    w2 = jax.random.normal(k3, (C_out, C_out, K), dtype=jnp.float32) * 0.1
    b2 = jax.random.normal(k4, (C_out,), dtype=jnp.float32) * 0.1

    ref = _block_ref(x, w1, b1, w2, b2)

    # Exact f32 MXU path.
    out = jax.block_until_ready(
        block_forward(x, w1, b1, w2, b2, compute_dtype=jnp.float32))
    assert out.shape == (N, C_out, L - 2 * (K - 1)), out.shape
    assert jnp.allclose(out, ref, atol=1e-5, rtol=1e-5), \
        float(jnp.max(jnp.abs(out - ref)))

    # Default bf16 DMA/MXU operands, f32 accumulation.
    out_bf16 = jax.block_until_ready(block_forward(x, w1, b1, w2, b2))
    assert jnp.allclose(out_bf16, ref, atol=5e-2, rtol=5e-2), \
        float(jnp.max(jnp.abs(out_bf16 - ref)))

    # A second, slightly larger case exercising the batch-fold path (BN > 1,
    # multiple grid steps, batch padding).
    N2 = 5
    x2 = jax.random.normal(jax.random.PRNGKey(1), (N2, C_in, L), jnp.float32)
    ref2 = _block_ref(x2, w1, b1, w2, b2)
    out2 = jax.block_until_ready(
        block_forward(x2, w1, b1, w2, b2, compute_dtype=jnp.float32))
    assert out2.shape == ref2.shape, out2.shape
    assert jnp.allclose(out2, ref2, atol=1e-5, rtol=1e-5), \
        float(jnp.max(jnp.abs(out2 - ref2)))

    print("KERNEL_OK")
</pallas_src>

<mosaic_0001>
module attributes {stable_mosaic.version = 11 : i64} {
  func.func @block_kernel(%arg0: i32, %arg1: memref<1x4x128xf32, #tpu.memory_space<vmem>>, %arg2: memref<3x8x4xf32, #tpu.memory_space<vmem>>, %arg3: memref<3x8x8xf32, #tpu.memory_space<vmem>>, %arg4: memref<8x1xf32, #tpu.memory_space<vmem>>, %arg5: memref<8x1xf32, #tpu.memory_space<vmem>>, %arg6: memref<1x8x128xf32, #tpu.memory_space<vmem>>) attributes {dimension_semantics = [#tpu.dimension_semantics<parallel>], iteration_bounds = array<i64: 2>, scalar_prefetch = 0 : i64, scratch_operands = 0 : i64, tpu.core_type = #tpu.core_type<tc>, window_params = [{transform_indices = @transform_0, window_bounds = array<i64: 1, 4, 128>}, {pipeline_mode = #tpu.pipeline_mode<synchronous>, transform_indices = @transform_1, window_bounds = array<i64: 3, 8, 4>}, {pipeline_mode = #tpu.pipeline_mode<synchronous>, transform_indices = @transform_2, window_bounds = array<i64: 3, 8, 8>}, {pipeline_mode = #tpu.pipeline_mode<synchronous>, transform_indices = @transform_3, window_bounds = array<i64: 8, 1>}, {pipeline_mode = #tpu.pipeline_mode<synchronous>, transform_indices = @transform_4, window_bounds = array<i64: 8, 1>}, {transform_indices = @transform_5, window_bounds = array<i64: 1, 8, 128>}]} {
    %c0 = arith.constant 0 : index
    %c0_0 = arith.constant 0 : index
    %c0_1 = arith.constant 0 : index
    %0 = vector.load %arg1[%c0, %c0_0, %c0_1] : memref<1x4x128xf32, #tpu.memory_space<vmem>>, vector<1x4x128xf32>
    %1 = vector.shape_cast %0 : vector<1x4x128xf32> to vector<4x128xf32>
    %c0_2 = arith.constant 0 : index
    %c0_3 = arith.constant 0 : index
    %c0_4 = arith.constant 0 : index
    %2 = vector.load %arg2[%c0_2, %c0_3, %c0_4] : memref<3x8x4xf32, #tpu.memory_space<vmem>>, vector<1x8x4xf32>
    %3 = vector.shape_cast %2 : vector<1x8x4xf32> to vector<8x4xf32>
    %cst = arith.constant dense<0.000000e+00> : vector<8x128xf32>
    %4 = tpu.matmul %3, %1, %cst {dimension_numbers = #tpu.dot_dimension_numbers<[1], [0], [0], [1], [0, 0, 1, 1], [], []>} : vector<8x4xf32>, vector<4x128xf32>, vector<8x128xf32> -> vector<8x128xf32>
    %c127_i32 = arith.constant 127 : i32
    %5 = tpu.dynamic_rotate %1 by %c127_i32 dim 1 : vector<4x128xf32>, i32 -> vector<4x128xf32>
    %c1 = arith.constant 1 : index
    %c0_5 = arith.constant 0 : index
    %c0_6 = arith.constant 0 : index
    %6 = vector.load %arg2[%c1, %c0_5, %c0_6] : memref<3x8x4xf32, #tpu.memory_space<vmem>>, vector<1x8x4xf32>
    %7 = vector.shape_cast %6 : vector<1x8x4xf32> to vector<8x4xf32>
    %cst_7 = arith.constant dense<0.000000e+00> : vector<8x128xf32>
    %8 = tpu.matmul %7, %5, %cst_7 {dimension_numbers = #tpu.dot_dimension_numbers<[1], [0], [0], [1], [0, 0, 1, 1], [], []>} : vector<8x4xf32>, vector<4x128xf32>, vector<8x128xf32> -> vector<8x128xf32>
    %9 = arith.addf %4, %8 : vector<8x128xf32>
    %c126_i32 = arith.constant 126 : i32
    %10 = tpu.dynamic_rotate %1 by %c126_i32 dim 1 : vector<4x128xf32>, i32 -> vector<4x128xf32>
    %c2 = arith.constant 2 : index
    %c0_8 = arith.constant 0 : index
    %c0_9 = arith.constant 0 : index
    %11 = vector.load %arg2[%c2, %c0_8, %c0_9] : memref<3x8x4xf32, #tpu.memory_space<vmem>>, vector<1x8x4xf32>
    %12 = vector.shape_cast %11 : vector<1x8x4xf32> to vector<8x4xf32>
    %cst_10 = arith.constant dense<0.000000e+00> : vector<8x128xf32>
    %13 = tpu.matmul %12, %10, %cst_10 {dimension_numbers = #tpu.dot_dimension_numbers<[1], [0], [0], [1], [0, 0, 1, 1], [], []>} : vector<8x4xf32>, vector<4x128xf32>, vector<8x128xf32> -> vector<8x128xf32>
    %14 = arith.addf %9, %13 : vector<8x128xf32>
    %c0_11 = arith.constant 0 : index
    %c0_12 = arith.constant 0 : index
    %15 = vector.load %arg4[%c0_11, %c0_12] : memref<8x1xf32, #tpu.memory_space<vmem>>, vector<8x1xf32>
    %16 = vector.broadcast %15 : vector<8x1xf32> to vector<8x128xf32>
    %17 = arith.addf %14, %16 : vector<8x128xf32>
    %cst_13 = arith.constant 0.000000e+00 : f32
    %18 = vector.broadcast %cst_13 : f32 to vector<8x128xf32>
    %19 = arith.cmpf ogt, %17, %18 : vector<8x128xf32>
    %cst_14 = arith.constant 2.000000e-01 : f32
    %20 = vector.broadcast %cst_14 : f32 to vector<8x128xf32>
    %21 = arith.mulf %20, %17 : vector<8x128xf32>
    %22 = arith.select %19, %17, %21 : vector<8x128xi1>, vector<8x128xf32>
    %c0_15 = arith.constant 0 : index
    %c0_16 = arith.constant 0 : index
    %c0_17 = arith.constant 0 : index
    %23 = vector.load %arg3[%c0_15, %c0_16, %c0_17] : memref<3x8x8xf32, #tpu.memory_space<vmem>>, vector<1x8x8xf32>
    %24 = vector.shape_cast %23 : vector<1x8x8xf32> to vector<8x8xf32>
    %cst_18 = arith.constant dense<0.000000e+00> : vector<8x128xf32>
    %25 = tpu.matmul %24, %22, %cst_18 {dimension_numbers = #tpu.dot_dimension_numbers<[1], [0], [0], [1], [0, 0, 1, 1], [], []>} : vector<8x8xf32>, vector<8x128xf32>, vector<8x128xf32> -> vector<8x128xf32>
    %c127_i32_19 = arith.constant 127 : i32
    %26 = tpu.dynamic_rotate %22 by %c127_i32_19 dim 1 : vector<8x128xf32>, i32 -> vector<8x128xf32>
    %c1_20 = arith.constant 1 : index
    %c0_21 = arith.constant 0 : index
    %c0_22 = arith.constant 0 : index
    %27 = vector.load %arg3[%c1_20, %c0_21, %c0_22] : memref<3x8x8xf32, #tpu.memory_space<vmem>>, vector<1x8x8xf32>
    %28 = vector.shape_cast %27 : vector<1x8x8xf32> to vector<8x8xf32>
    %cst_23 = arith.constant dense<0.000000e+00> : vector<8x128xf32>
    %29 = tpu.matmul %28, %26, %cst_23 {dimension_numbers = #tpu.dot_dimension_numbers<[1], [0], [0], [1], [0, 0, 1, 1], [], []>} : vector<8x8xf32>, vector<8x128xf32>, vector<8x128xf32> -> vector<8x128xf32>
    %30 = arith.addf %25, %29 : vector<8x128xf32>
    %c126_i32_24 = arith.constant 126 : i32
    %31 = tpu.dynamic_rotate %22 by %c126_i32_24 dim 1 : vector<8x128xf32>, i32 -> vector<8x128xf32>
    %c2_25 = arith.constant 2 : index
    %c0_26 = arith.constant 0 : index
    %c0_27 = arith.constant 0 : index
    %32 = vector.load %arg3[%c2_25, %c0_26, %c0_27] : memref<3x8x8xf32, #tpu.memory_space<vmem>>, vector<1x8x8xf32>
    %33 = vector.shape_cast %32 : vector<1x8x8xf32> to vector<8x8xf32>
    %cst_28 = arith.constant dense<0.000000e+00> : vector<8x128xf32>
    %34 = tpu.matmul %33, %31, %cst_28 {dimension_numbers = #tpu.dot_dimension_numbers<[1], [0], [0], [1], [0, 0, 1, 1], [], []>} : vector<8x8xf32>, vector<8x128xf32>, vector<8x128xf32> -> vector<8x128xf32>
    %35 = arith.addf %30, %34 : vector<8x128xf32>
    %c0_29 = arith.constant 0 : index
    %c0_30 = arith.constant 0 : index
    %36 = vector.load %arg5[%c0_29, %c0_30] : memref<8x1xf32, #tpu.memory_space<vmem>>, vector<8x1xf32>
    %37 = vector.broadcast %36 : vector<8x1xf32> to vector<8x128xf32>
    %38 = arith.addf %35, %37 : vector<8x128xf32>
    %cst_31 = arith.constant 0.000000e+00 : f32
    %39 = vector.broadcast %cst_31 : f32 to vector<8x128xf32>
    %40 = arith.cmpf ogt, %38, %39 : vector<8x128xf32>
    %cst_32 = arith.constant 2.000000e-01 : f32
    %41 = vector.broadcast %cst_32 : f32 to vector<8x128xf32>
    %42 = arith.mulf %41, %38 : vector<8x128xf32>
    %43 = arith.select %40, %38, %42 : vector<8x128xi1>, vector<8x128xf32>
    %c0_33 = arith.constant 0 : index
    %c0_34 = arith.constant 0 : index
    %c0_35 = arith.constant 0 : index
    %44 = vector.load %arg6[%c0_33, %c0_34, %c0_35] : memref<1x8x128xf32, #tpu.memory_space<vmem>>, vector<1x8x128xf32>
    %45 = vector.shape_cast %44 : vector<1x8x128xf32> to vector<8x128xf32>
    %46 = vector.shape_cast %43 : vector<8x128xf32> to vector<1x8x128xf32>
    tpu.vector_store %arg6[%c0_33, %c0_34, %c0_35], %46 {strides = array<i32>} : memref<1x8x128xf32, #tpu.memory_space<vmem>>, vector<1x8x128xf32>,
    return
  }
  func.func @transform_0(%arg0: i32) -> (i32, i32, i32) {
    %c0_i32 = arith.constant 0 : i32
    %c0_i32_0 = arith.constant 0 : i32
    %c0_i32_1 = arith.constant 0 : i32
    return %arg0, %c0_i32, %c0_i32_0 : i32, i32, i32
  }
  func.func @transform_1(%arg0: i32) -> (i32, i32, i32) {
    %c0_i32 = arith.constant 0 : i32
    %c0_i32_0 = arith.constant 0 : i32
    %c0_i32_1 = arith.constant 0 : i32
    %c0_i32_2 = arith.constant 0 : i32
    return %c0_i32, %c0_i32_0, %c0_i32_1 : i32, i32, i32
  }
  func.func @transform_2(%arg0: i32) -> (i32, i32, i32) {
    %c0_i32 = arith.constant 0 : i32
    %c0_i32_0 = arith.constant 0 : i32
    %c0_i32_1 = arith.constant 0 : i32
    %c0_i32_2 = arith.constant 0 : i32
    return %c0_i32, %c0_i32_0, %c0_i32_1 : i32, i32, i32
  }
  func.func @transform_3(%arg0: i32) -> (i32, i32) {
    %c0_i32 = arith.constant 0 : i32
    %c0_i32_0 = arith.constant 0 : i32
    %c0_i32_1 = arith.constant 0 : i32
    return %c0_i32, %c0_i32_0 : i32, i32
  }
  func.func @transform_4(%arg0: i32) -> (i32, i32) {
    %c0_i32 = arith.constant 0 : i32
    %c0_i32_0 = arith.constant 0 : i32
    %c0_i32_1 = arith.constant 0 : i32
    return %c0_i32, %c0_i32_0 : i32, i32
  }
  func.func @transform_5(%arg0: i32) -> (i32, i32, i32) {
    %c0_i32 = arith.constant 0 : i32
    %c0_i32_0 = arith.constant 0 : i32
    %c0_i32_1 = arith.constant 0 : i32
    return %arg0, %c0_i32, %c0_i32_0 : i32, i32, i32
  }
}

</mosaic_0001>

<bundles_post_ra>
// kernel: tpu_custom_call.1
= control target key start
LH: loop header
LB: loop body
LE: loop exit
PB: predicated region body
PF: predicated region fallthrough
CT: control target
= control target key end

     0   :  { %10 = vsyncpa [#allocation3], 0  ;;  %s1149_s0 = inlined_call_operand.vmem [shape: f32[2,4,128], index: 0, kind: input, shape index: {}]   ;;  %s1150_s1 = inlined_call_operand.vmem [shape: f32[3,8,4], index: 1, kind: input, shape index: {}]   ;;  %s1151_s2 = inlined_call_operand.vmem [shape: f32[3,8,8], index: 2, kind: input, shape index: {}]   ;;  %s1152_s3 = inlined_call_operand.vmem [shape: f32[8,1], index: 3, kind: input, shape index: {}]   ;;  %s1153_s4 = inlined_call_operand.vmem [shape: f32[8,1], index: 4, kind: input, shape index: {}]   ;;  %s1154_s5 = inlined_call_operand.hbm [shape: f32[2,8,128], index: 5, kind: output, shape index: {}]  }
   0x1   :  { %12 = vsyncpa [#allocation3 + $0x1], 0  ;;  %s996_s18 = smov 0   ;;  %s998_s19 = smov 0  }
   0x2   :  { %s1000_s20 = smov 0   ;;  %s1002_s21 = smov 0  }
   0x3 LB: > { %s1017_s22 = sadd.s32 4294967295, %s958_s21   ;;  %s785_s23 = sadd.s32 4294967294, %s958_s21   ;;  %s958_s21 = sphi %s1002_s21, %s1160_s21   ;;  %s954_s20 = sphi %s1000_s20, %s1159_s20   ;;  %s950_s19 = sphi %s998_s19, %s1158_s19   ;;  %s946_s18 = sphi %s996_s18, %s1157_s18  }
   0x4   : > { %s1021_s24 = sadd.s32 1, %s958_s21   ;;  %s135_s25 = sadd.s32 1, %s954_s20 }
   0x5   : > { %s132_s26 = ssub.s32 %s958_s21, %s1021_s24  ;;  %p145_p0 = scmp.ne.s32.totalorder %s954_s20, %s950_s19 }
   0x6   : > { %p133_p1 = scmp.eq.s32.totalorder %s132_s26, 0  ;;  %p146_p2 = scmp.eq.s32.totalorder %s1017_s22, 1 }
   0x7   : > { %p151_p3 = scmp.ne.s32.totalorder %s950_s19, %s946_s18  ;;  %p152_p4 = scmp.eq.s32.totalorder %s785_s23, 1 }
   0x8   : > { %s1032_s27 = scalar_select %p133_p1, %s954_s20, %s135_s25  }
   0x9   : > { %p1034_p5 = por %p146_p2, %p145_p0  ;;  %p1038_p6 = por %p152_p4, %p151_p3 }
   0xa   : > { %p788_p7 = scmp.ge.s32.totalorder %s958_s21, 1  ;;  %p189_p8 = scmp.lt.s32.totalorder %s958_s21, 3 }
   0xc   : > { %p190_p9 = pnand %p788_p7, %p189_p8 }
   0xd   : > { %p216_p10 = scmp.lt.s32.totalorder (!%p190_p9), %s1017_s22, 1  ;;  %v960_v0 = vmov (!%p190_p9), 0.0   ;;  %v461_v1 = vld [vmem:[%s1152_s3] sm:$0xff] (!%p190_p9)  ;;  %vm961_vm0 = vmmov (!%p190_p9), 0   ;;  %v962_v2 = vmov (!%p190_p9), 0   ;;  %vm230_vm1 = vcmask (!%p190_p9), 1043456  }
   0xe   : > { %193 = sbr.rel (%p190_p9) target bundleno = 718 (0x2ce), region = 40  ;;  %820 = vmatprep.subr.mxu0 (!%p190_p9), %v960_v0  ;;  %825 = vmatprep.subr.mxu1 (!%p190_p9), %v960_v0  ;;  %vm226_vm2 = vcmask (!%p190_p9), 31744   ;;  %v221_v3 = vld [vmem:[%s1150_s1] sm:$0xff] (!%p190_p9)  ;;  %s963_s14 = smov (!%p190_p9), 127   ;;  %v791_v5 = vld [vmem:[%s1150_s1 + $0x8] sm:$0xff] (!%p190_p9)  ;;  %v796_v7 = vld [vmem:[%s1150_s1 + $0x10] sm:$0xff] (!%p190_p9) }
   0xf   : > { %822 = vmatprep.mubr.msk.f32.mxu0 (!%p190_p9), %vm961_vm0, %v960_v0  ;;  %827 = vmatprep.mubr.msk.f32.mxu1 (!%p190_p9), %vm961_vm0, %v960_v0  ;;  %s964_s15 = smov (!%p190_p9), 126   ;;  %vm476_vm4 = vcmask (!%p190_p9), 64512   ;;  %v471_v21 = vld [vmem:[%s1151_s2] sm:$0xff] (!%p190_p9)  ;;  %v799_v23 = vld [vmem:[%s1151_s2 + $0x8] sm:$0xff] (!%p190_p9)  ;;  %v802_v26 = vld [vmem:[%s1151_s2 + $0x10] sm:$0xff] (!%p190_p9)  ;;  %s213_s12 = sand.u32 (!%p190_p9), 1, %s950_s19  }
  0x10   : > { %894 = vset.pattern.permute.xlu1 (!%p190_p9), %v962_v2  ;;  %895 = vset.pattern.permute.xlu0 (!%p190_p9), %v962_v2  ;;  %v701_v22 = vld [vmem:[%s1153_s4] sm:$0xff] (!%p190_p9)  ;;  %s789_s13 = sshll.u32 (!%p190_p9), %s213_s12, 3  ;;  %s713_s26 = scalar_lea.sflag (!%p190_p9), [#allocation3], %s213_s12 }
  0x11   : > { %464 = vperm.xlu1 (!%p190_p9), %894, %v461_v1  }
  0x15   : > { %s217_s7 = scalar_select %p216_p10, %s1017_s22, 1 }
  0x17   : > { %s790_s8 = sshll.u32 %s217_s7, 2 }
  0x18   : > { %s219_s11 = scalar_lea.vmem %s1149_s0, %s790_s8 }
  0x19   : > { %v220_v4 = vld [vmem:[%s219_s11] sm:$0xf] }
  0x1a   : > { %222 = vrot.lane.b32.xlu0 %v220_v4, %s963_s14  ;;  %826 = vmatpush3.msk.msra.mxu1 %vm230_vm1, %v220_v4 }
  0x1b   : > { %828 = vmatmul.mubr.msk.f32.vlgmr.msra.gmra.mrb[0].mxu1 %vm226_vm2, %v221_v3  ;;  %835 = vmatprep.subr.mxu1 %v960_v0 }
  0x1c   : > { %837 = vmatprep.mubr.msk.f32.mxu1 %vm961_vm0, %v960_v0 }
  0x1e   : > { %380 = vrot.lane.b32.xlu0 %v220_v4, %s964_s15 }
  0x8c   : > { %v223_v6 = vpop.permute.xlu0 %222 }
  0x8d   : > { %821 = vmatpush3.msk.msra.mxu0 %vm230_vm1, %v223_v6 }
  0x8e   : > { %823 = vmatmul.mubr.msk.f32.vlgmr.msra.gmra.mrb[0].mxu0 %vm226_vm2, %v791_v5  ;;  %830 = vmatprep.subr.mxu0 %v960_v0 }
  0x8f   : > { %832 = vmatprep.mubr.msk.f32.mxu0 %vm961_vm0, %v960_v0 }
  0x90   : > { %v381_v8 = vpop.permute.xlu0 %380  ;;  %v465_v15 = vpop.permute.xlu1 %464 }
  0x91   : > { %831 = vmatpush3.msk.msra.mxu0 %vm230_vm1, %v381_v8 }
  0x92   : > { %833 = vmatmul.mubr.msk.f32.vlgmr.msra.gmra.mrb[2].mxu0 %vm226_vm2, %v796_v7  ;;  %840 = vmatprep.subr.mxu0 %v960_v0 }
  0x93   : > { %842 = vmatprep.mubr.msk.f32.mxu0 %vm961_vm0, %v960_v0 }
  0xee   : > { %v376_v9 = vpop.f32.mrb[0].mxu1 }
  0xef   : > { %v829_v10 = vpop.f32.mrb[1].mxu1 }
 0x161   : > { %v300_v11 = vpop.f32.mrb[0].mxu0 }
 0x162   : > { %v377_v12 = vadd.f32 %v376_v9, %v300_v11  ;;  %v824_v13 = vpop.f32.mrb[1].mxu0 }
 0x165   : > { %v456_v14 = vpop.f32.mrb[2].mxu0 }
 0x166   : > { %v460_v16 = vadd.f32 %v456_v14, %v377_v12  ;;  %v834_v17 = vpop.f32.mrb[3].mxu0 }
 0x168   : > { %v467_v18 = vadd.f32 %v465_v15, %v460_v16 }
 0x16a   : > { %v469_v19 = vmul.f32 0.2, %v467_v18  ;;  %vm468_vm3 = vcmp.gt.f32.partialorder %v467_v18, 0.0 }
 0x16c   : > { %v470_v20 = vsel %vm468_vm3, %v467_v18, %v469_v19 }
 0x16d   : > { %623 = vrot.lane.b32.xlu0 %v470_v20, %s964_s15  ;;  %472 = vrot.lane.b32.xlu1 %v470_v20, %s963_s14  ;;  %s805_s14 = sshll.u32 %s1017_s22, 7  ;;  %s215_s15 = scalar_lea.vmem [#allocation2], %s789_s13 }
 0x16e   : > { %841 = vmatpush3.msra.mxu0 %v470_v20  ;;  %s726_s16 = sshll.u32 %s215_s15, 4  ;;  %s1107_s25 = scalar_lea.hbm %s1154_s5, %s805_s14  ;;  %s1109_s16 = int_to_ptr.vmem [resolvable:$true] %s726_s16 }
 0x16f   : > { %843 = vmatmul.mubr.msk.f32.vlgmr.msra.gmra.mrb[4].mxu0 %vm476_vm4, %v471_v21  ;;  %s896_s30 = scalar_lea.vmem %s1109_s16, 128  ;;  %s965_s22 = smov [#allocation2]  }
 0x170   : > { %p897_p11 = scmp.ne.s32.totalorder %s1109_s16, %s896_s30  ;;  %s900_s6 = sshll.u32 %s965_s22, 4  ;;  %s901_s6 = int_to_ptr.vmem [resolvable:$false] %s900_s6 }
 0x171   : > { %704 = vperm.xlu1 %894, %v701_v22   ;;  %s902_s7 = scalar_lea.vmem %s901_s6, 256  ;;  %p903_p0 = scmp.lt.s32.totalorder %s1109_s16, %s901_s6 }
 0x172   : > { %p898_p12 = pnand %p897_p11, %p1034_p5  ;;  %p904_p1 = scmp.lt.s32.totalorder %s902_s7, %s896_s30 }
 0x174   : > { %p899_p13 = pneg %p898_p12  ;;  %p905_p2 = por %p904_p1, %p903_p0 }
 0x176   : > { %p906_p3 = pnand %p905_p2, %p899_p13 }
 0x1df   : > { %v473_v24 = vpop.permute.xlu1 %472  ;;  %v624_v25 = vpop.permute.xlu0 %623 }
 0x1e0   : > { %836 = vmatpush3.msra.mxu1 %v473_v24 }
 0x1e1   : > { %838 = vmatmul.mubr.msk.f32.vlgmr.msra.gmra.mrb[2].mxu1 %vm476_vm4, %v799_v23  ;;  %845 = vmatprep.subr.mxu1 %v960_v0 }
 0x1e2   : > { %846 = vmatpush3.msra.mxu1 %v624_v25  ;;  %847 = vmatprep.mubr.msk.f32.mxu1 %vm961_vm0, %v960_v0 }
 0x1e5   : > { %848 = vmatmul.mubr.msk.f32.vlgmr.msra.gmra.mrb[4].mxu1 %vm476_vm4, %v802_v26 }
 0x1f0   : > { %v705_v35 = vpop.permute.xlu1 %704 }
 0x242   : > { %v619_v27 = vpop.f32.mrb[4].mxu0 }
 0x243   : > { %v844_v28 = vpop.f32.mrb[5].mxu0 }
 0x2b4   : > { %v546_v29 = vpop.f32.mrb[2].mxu1 }
 0x2b5   : > { %v620_v30 = vadd.f32 %v619_v27, %v546_v29  ;;  %v839_v31 = vpop.f32.mrb[3].mxu1 }
 0x2b8   : > { %v696_v32 = vpop.f32.mrb[4].mxu1 }
 0x2b9   : > { %v700_v33 = vadd.f32 %v696_v32, %v620_v30  ;;  %v849_v34 = vpop.f32.mrb[5].mxu1 }
 0x2bb   : > { %v707_v36 = vadd.f32 %v705_v35, %v700_v33 }
 0x2bd   : > { %v709_v37 = vmul.f32 0.2, %v707_v36  ;;  %vm708_vm5 = vcmp.gt.f32.partialorder %v707_v36, 0.0 }
 0x2bf   : > { %v710_v38 = vsel %vm708_vm5, %v707_v36, %v709_v37 }
 0x2c0   : > { %711 = vst [vmem:[%s215_s15] sm:$0xff] %v710_v38 }
 0x2c1   : > { %909 = shalt.err (!%p906_p3)
}
 0x2c2   : > { %s910_s8 = scalar_lea.hbm %s1107_s25, 128  ;;  %s914_s11 = scalar_lea.hbm %s1154_s5, 256 }
 0x2c3   : > { %p911_p4 = scmp.ne.s32.totalorder %s1107_s25, %s910_s8  ;;  %p915_p9 = scmp.lt.u32.totalorder %s1107_s25, %s1154_s5 }
 0x2c4   : > { %p916_p10 = scmp.lt.u32.totalorder %s914_s11, %s910_s8  ;;  %p918_p12 = scmp.lt.u32.totalorder %s910_s8, %s1107_s25 }
 0x2c5   : > { %p912_p7 = pnand %p911_p4, %p1034_p5 }
 0x2c6   : > { %p917_p11 = por %p916_p10, %p915_p9 }
 0x2c7   : > { %p913_p8 = pneg %p912_p7 }
 0x2c8   : > { %p919_p13 = por %p918_p12, %p917_p11 }
 0x2ca   : > { %p920_p0 = pnand %p919_p13, %p913_p8 }
 0x2cc   : > { %923 = shalt.err (!%p920_p0)
}
 0x2cd   : > { %850 = dma.vmem_to_hbm [thread:$0]  (%p1034_p5), %s1109_s16, 128, %s1107_s25, %s713_s26  }
 0x2ce PF: > { %p856_p1 = scmp.ge.s32.totalorder %s958_s21, 2  ;;  %s738_s14 = sand.u32 1, %s946_s18  }
 0x2cf   : > { %s739_s15 = scalar_lea.sflag [#allocation3], %s738_s14 }
 0x2d0   : > { %p853_p2 = pnand %p856_p1, %p1038_p6 }
 0x2d2   : > { %941 = dma.done.wait (!%p853_p2), %s739_s15, 128  }
 0x2d3   : > { %943 = vsyncadd (!%p853_p2), %s739_s15, 4294967168  ;;  %p15_p3 = scmp.ge.s32.totalorder %s1021_s24, 4   ;;  %s1157_s18 = smov %s950_s19 }
 0x2d4   : > { %s1158_s19 = smov %s954_s20  ;;  %s1159_s20 = smov %s1032_s27 }
 0x2d5   : > { %s1160_s21 = smov %s1021_s24  ;;  %17 = sbr.rel (!%p15_p3) target bundleno = 3 (0x3), region = 79 }
 0x2dc   :  { %744 = vsyncpa [#allocation3], 1 }
 0x2dd   :  { %746 = vsyncpa [#allocation3 + $0x1], 1 }

</bundles_post_ra>
